<compile_context>
chip_gen: v7x
topology: tpu7x:2x2x1
jax: 0.10.0
libtpu: 0.0.40
codegen_flags: <defaults>
</compile_context>

<pallas_src>
import functools

import numpy as np
import jax
import jax.numpy as jnp
from jax.experimental import pallas as pl
from jax.experimental.pallas import tpu as pltpu

_BN_EPS = 1e-5
_LEAKY_SLOPE = 0.01


# --------------------------------------------------------------------------- #
# Kernel building blocks
# --------------------------------------------------------------------------- #
def _leaky_relu(x):
    # max(x, 0.01*x): 1 mul + 1 max per element (vs mul + cmp + select).
    return jnp.maximum(x, _LEAKY_SLOPE * x)


def _first_layer(state_ref, action_ref, w1s_ref, w1a_ref):
    """h1 = cat([state, action]) @ W1 with the concat fused into two dots."""
    s = state_ref[...].astype(jnp.bfloat16)
    a = action_ref[...].astype(jnp.bfloat16)
    return (jnp.dot(s, w1s_ref[...], preferred_element_type=jnp.float32)
            + jnp.dot(a, w1a_ref[...], preferred_element_type=jnp.float32))


def _head(h1_normed, w2_ref, b2_ref, w3_ref, b3_ref):
    """leaky_relu -> fc2 -> leaky_relu -> fc3 (VPU row-dot) -> [tile, 1]."""
    xs = _leaky_relu(h1_normed)
    h2 = jnp.dot(xs.astype(jnp.bfloat16), w2_ref[...],
                 preferred_element_type=jnp.float32) + b2_ref[...]
    x2 = _leaky_relu(h2)
    # fc3 is a [*,256] @ [256,1] matvec: VPU multiply + lane reduction keeps a
    # (tile, 1) column layout, so no sublane->lane relayout before the store.
    return jnp.sum(x2 * w3_ref[...], axis=-1, keepdims=True) + b3_ref[...]


def _critic_fused_kernel(state_ref, action_ref, w1s_ref, w1a_ref,
                         gamma_ref, beta_ref, w2_ref, b2_ref, w3_ref, b3_ref,
                         out_ref):
    """Single-tile path: whole forward (incl. BN batch stats) in one kernel."""
    h1 = _first_layer(state_ref, action_ref, w1s_ref, w1a_ref)
    # Train-mode BatchNorm, one pass over h1: var = E[h1^2] - mean^2.
    # fcs1 bias omitted on purpose (cancelled by the batch-mean subtraction).
    inv_b = 1.0 / h1.shape[0]
    mean = jnp.sum(h1, axis=0, keepdims=True) * inv_b
    var = jnp.maximum(
        jnp.sum(h1 * h1, axis=0, keepdims=True) * inv_b - mean * mean, 0.0)
    scale = gamma_ref[...] * jax.lax.rsqrt(var + _BN_EPS)
    shift = beta_ref[...] - mean * scale
    out_ref[...] = _head(h1 * scale + shift, w2_ref, b2_ref, w3_ref, b3_ref)


def _bn_stats_kernel(state_ref, action_ref, w1s_ref, w1a_ref,
                     fsum_ref, fsq_ref, *, batch, tile):
    """Pass 1 of the gridded path: per-feature sum / sum-sq of h1 over batch."""
    i = pl.program_id(0)

    @pl.when(i == 0)
    def _():
        fsum_ref[...] = jnp.zeros_like(fsum_ref)
        fsq_ref[...] = jnp.zeros_like(fsq_ref)

    h1 = _first_layer(state_ref, action_ref, w1s_ref, w1a_ref)
    if batch % tile != 0:
        # Ragged last tile: zero rows beyond the true batch so the padded
        # (undefined) rows do not pollute the statistics.
        row = i * tile + jax.lax.broadcasted_iota(jnp.int32, h1.shape, 0)
        h1 = jnp.where(row < batch, h1, 0.0)
    fsum_ref[...] += jnp.sum(h1, axis=0, keepdims=True)
    fsq_ref[...] += jnp.sum(h1 * h1, axis=0, keepdims=True)


def _critic_tile_kernel(state_ref, action_ref, w1s_ref, w1a_ref,
                        scale_ref, shift_ref, w2_ref, b2_ref, w3_ref, b3_ref,
                        out_ref):
    """Pass 2 of the gridded path: normalize + fc2 + fc3 for one batch tile."""
    h1 = _first_layer(state_ref, action_ref, w1s_ref, w1a_ref)
    out_ref[...] = _head(h1 * scale_ref[...] + shift_ref[...],
                         w2_ref, b2_ref, w3_ref, b3_ref)


# --------------------------------------------------------------------------- #
# Wrapper
# --------------------------------------------------------------------------- #
def _vmem_capacity_bytes():
    try:
        return int(pltpu.get_tpu_info().vmem_capacity_bytes)
    except Exception:
        return 64 * 1024 * 1024  # conservative: v7x per-TensorCore VMEM


def _tile_and_vmem_limit():
    cap = _vmem_capacity_bytes()
    if cap >= 100 * 1024 * 1024:          # v5e / v6e: 128 MiB physical VMEM
        return 2048, 96 * 1024 * 1024
    return 1024, 48 * 1024 * 1024         # v7x (64 MiB per TC) or unknown


def critic_forward(state, action, params, batch_tile=None):
    """Fused Critic forward (train-mode BatchNorm). Returns Q-values [B, 1].

    Inputs are passed through in the caller's dtype (f32 or bf16); the kernel
    casts to bf16 for the MXU internally with f32 accumulation.
    """
    B, d_state = state.shape
    d_action = action.shape[1]
    f1, f2 = params["w2"].shape

    auto_tile, vmem_limit = _tile_and_vmem_limit()
    tile = int(batch_tile) if batch_tile is not None else auto_tile

    vmem = pltpu.MemorySpace.VMEM
    w1_args = (params["w1_state"], params["w1_action"])
    head_args = (params["w2"], params["b2"], params["w3_row"], params["b3"])

    in_bytes = int(state.size * state.dtype.itemsize
                   + action.size * action.dtype.itemsize)
    weight_bytes = int(sum(int(np.prod(p.shape)) * p.dtype.itemsize
                           for p in w1_args + head_args
                           + (params["bn_gamma"], params["bn_beta"])))
    l1_flops = 2 * B * (d_state + d_action) * f1
    head_flops = 2 * B * f1 * f2 + 2 * B * f2

    if B <= tile:
        # --- Small batch: fully fused single-block kernel. ------------------ #
        return pl.pallas_call(
            _critic_fused_kernel,
            out_shape=jax.ShapeDtypeStruct((B, 1), jnp.float32),
            in_specs=[pl.BlockSpec(memory_space=vmem)] * 10,
            out_specs=pl.BlockSpec(memory_space=vmem),
            compiler_params=pltpu.CompilerParams(vmem_limit_bytes=vmem_limit),
            cost_estimate=pl.CostEstimate(
                flops=int(l1_flops + head_flops),
                transcendentals=int(f1),
                bytes_accessed=int(in_bytes + weight_bytes + B * 4)),
        )(state, action, *w1_args, params["bn_gamma"], params["bn_beta"],
          *head_args)

    # --- Large batch: two-pass BatchNorm over a batch grid. ----------------- #
    n_tiles = pl.cdiv(B, tile)

    def tile_spec(d):
        return pl.BlockSpec((tile, d), lambda i: (i, 0))

    def const_spec(shape):
        # Constant block index -> block stays VMEM-resident across all tiles
        # (weights / BN vectors are DMA'd from HBM exactly once).
        return pl.BlockSpec(shape, lambda i: (0, 0))

    # Pass 1: per-feature sum / sum-of-squares of h1 (reduction over batch).
    fsum, fsq = pl.pallas_call(
        functools.partial(_bn_stats_kernel, batch=B, tile=tile),
        grid=(n_tiles,),
        out_shape=(jax.ShapeDtypeStruct((1, f1), jnp.float32),
                   jax.ShapeDtypeStruct((1, f1), jnp.float32)),
        in_specs=[tile_spec(d_state), tile_spec(d_action),
                  const_spec((d_state, f1)), const_spec((d_action, f1))],
        out_specs=(const_spec((1, f1)), const_spec((1, f1))),
        compiler_params=pltpu.CompilerParams(
            dimension_semantics=("arbitrary",), vmem_limit_bytes=vmem_limit),
        cost_estimate=pl.CostEstimate(
            flops=int(l1_flops + 3 * B * f1), transcendentals=0,
            bytes_accessed=int(in_bytes + weight_bytes + 2 * f1 * 4)),
    )(state, action, *w1_args)

    # Fold BN (batch stats + affine) into one per-feature scale/shift.
    # Tiny [1, F1] vectors -> plain XLA, negligible.
    mean = fsum * (1.0 / B)
    var = jnp.maximum(fsq * (1.0 / B) - mean * mean, 0.0)
    scale = params["bn_gamma"] * jax.lax.rsqrt(var + _BN_EPS)
    shift = params["bn_beta"] - mean * scale

    # Pass 2: normalize + fc2 + fc3; tiles independent -> "parallel" axis
    # (lets v7x's two TensorCores split the batch tiles).
    return pl.pallas_call(
        _critic_tile_kernel,
        grid=(n_tiles,),
        out_shape=jax.ShapeDtypeStruct((B, 1), jnp.float32),
        in_specs=[tile_spec(d_state), tile_spec(d_action),
                  const_spec((d_state, f1)), const_spec((d_action, f1)),
                  const_spec((1, f1)), const_spec((1, f1)),
                  const_spec((f1, f2)), const_spec((1, f2)),
                  const_spec((1, f2)), const_spec((1, 1))],
        out_specs=pl.BlockSpec((tile, 1), lambda i: (i, 0)),
        compiler_params=pltpu.CompilerParams(
            dimension_semantics=("parallel",), vmem_limit_bytes=vmem_limit),
        cost_estimate=pl.CostEstimate(
            flops=int(l1_flops + head_flops), transcendentals=0,
            bytes_accessed=int(in_bytes + weight_bytes + B * 4)),
    )(state, action, *w1_args, scale, shift, *head_args)


# --------------------------------------------------------------------------- #
# Parameters & pure-JAX reference
# --------------------------------------------------------------------------- #
def init_critic_params(state_size, action_size, seed,
                       fcs1_units=512, fc2_units=256):
    """Deterministic init mirroring Critic.reset_parameters().

    Note the original `hidden_init` uses weight.size()[0] == out_features as
    "fan_in" (a quirk of the reference code); reproduced exactly. Weights are
    stored [in, out] (transposed vs. nn.Linear); W1 is split into its state /
    action row blocks so the input concat can be fused away.
    """
    d_state, d_action = 2 * state_size, 2 * action_size
    key = jax.random.PRNGKey(seed)
    k1, k2, k3 = jax.random.split(key, 3)

    lim1 = 1.0 / np.sqrt(fcs1_units)   # weight.size()[0] of fcs1
    lim2 = 1.0 / np.sqrt(fc2_units)    # weight.size()[0] of fc2

    w1 = jax.random.uniform(k1, (d_state + d_action, fcs1_units),
                            jnp.float32, -lim1, lim1)
    w2 = jax.random.uniform(k2, (fcs1_units, fc2_units), jnp.float32,
                            -lim2, lim2)
    w3 = jax.random.uniform(k3, (fc2_units, 1), jnp.float32, -0.003, 0.003)

    return {
        # bf16 weights for the MXU (halved DMA bytes, f32 accumulation).
        "w1_state": w1[:d_state].astype(jnp.bfloat16),
        "w1_action": w1[d_state:].astype(jnp.bfloat16),
        # fcs1 bias (0.1) has no kernel input: exactly cancelled by the
        # batch-mean subtraction of train-mode BatchNorm.
        "bn_gamma": jnp.ones((1, fcs1_units), jnp.float32),
        "bn_beta": jnp.zeros((1, fcs1_units), jnp.float32),
        "w2": w2.astype(jnp.bfloat16),
        "b2": jnp.full((1, fc2_units), 0.1, jnp.float32),
        "w3_row": w3.T.astype(jnp.float32),      # (1, fc2_units), VPU path
        "b3": jnp.full((1, 1), 0.1, jnp.float32),
    }


def critic_forward_ref(state, action, params):
    """Pure-JAX f32 reference of the PyTorch forward (train-mode BN)."""
    w1 = jnp.concatenate([params["w1_state"], params["w1_action"]],
                         axis=0).astype(jnp.float32)
    x = jnp.concatenate([state.astype(jnp.float32),
                         action.astype(jnp.float32)], axis=1)
    h1 = x @ w1 + 0.1                                   # fcs1 bias = 0.1
    mean = jnp.mean(h1, axis=0, keepdims=True)
    var = jnp.mean((h1 - mean) ** 2, axis=0, keepdims=True)
    xs = (params["bn_gamma"] * (h1 - mean) * jax.lax.rsqrt(var + _BN_EPS)
          + params["bn_beta"])
    xs = jnp.where(xs > 0, xs, _LEAKY_SLOPE * xs)
    h2 = xs @ params["w2"].astype(jnp.float32) + params["b2"]
    x2 = jnp.where(h2 > 0, h2, _LEAKY_SLOPE * h2)
    return x2 @ params["w3_row"].astype(jnp.float32).T + params["b3"]


# TODO(synk): BatchNorm1d running_mean / running_var buffer updates of
# train() mode are module-state side effects and are not reproduced here.

if __name__ == "__main__":
    state_size, action_size = 8, 4
    params = init_critic_params(state_size, action_size, seed=0)

    key = jax.random.PRNGKey(0)
    ks, ka, kb, kc = jax.random.split(key, 4)

    # Path 1: small batch -> fused single-block kernel.
    state = jax.random.normal(ks, (4, 2 * state_size), jnp.float32)
    action = jax.random.uniform(ka, (4, 2 * action_size), jnp.float32,
                                -1.0, 1.0)
    q = critic_forward(state, action, params)
    jax.block_until_ready(q)
    assert q.shape == (4, 1), q.shape
    err = float(jnp.max(jnp.abs(q - critic_forward_ref(state, action, params))))
    assert err < 1e-2, f"fused path max abs err {err}"

    # Path 2: force the two-pass batch-grid path (small tile, ragged tail).
    state2 = jax.random.normal(kb, (40, 2 * state_size), jnp.float32)
    action2 = jax.random.uniform(kc, (40, 2 * action_size), jnp.float32,
                                 -1.0, 1.0)
    q2 = critic_forward(state2, action2, params, batch_tile=16)
    jax.block_until_ready(q2)
    assert q2.shape == (40, 1), q2.shape
    err2 = float(jnp.max(jnp.abs(q2 - critic_forward_ref(state2, action2,
                                                         params))))
    assert err2 < 1e-2, f"grid path max abs err {err2}"

    print("KERNEL_OK")
</pallas_src>

<mosaic_0001>
module attributes {stable_mosaic.version = 11 : i64} {
  func.func @_critic_fused_kernel(%arg0: memref<4x16xf32, #tpu.memory_space<vmem>>, %arg1: memref<4x8xf32, #tpu.memory_space<vmem>>, %arg2: memref<16x512xbf16, #tpu.memory_space<vmem>>, %arg3: memref<8x512xbf16, #tpu.memory_space<vmem>>, %arg4: memref<1x512xf32, #tpu.memory_space<vmem>>, %arg5: memref<1x512xf32, #tpu.memory_space<vmem>>, %arg6: memref<512x256xbf16, #tpu.memory_space<vmem>>, %arg7: memref<1x256xf32, #tpu.memory_space<vmem>>, %arg8: memref<1x256xf32, #tpu.memory_space<vmem>>, %arg9: memref<1x1xf32, #tpu.memory_space<vmem>>, %arg10: memref<4x1xf32, #tpu.memory_space<vmem>>) attributes {dimension_semantics = [], scalar_prefetch = 0 : i64, scratch_operands = 0 : i64, tpu.core_type = #tpu.core_type<tc>} {
    %c0 = arith.constant 0 : index
    %c0_0 = arith.constant 0 : index
    %0 = vector.load %arg0[%c0, %c0_0] : memref<4x16xf32, #tpu.memory_space<vmem>>, vector<4x16xf32>
    %1 = arith.truncf %0 : vector<4x16xf32> to vector<4x16xbf16>
    %c0_1 = arith.constant 0 : index
    %c0_2 = arith.constant 0 : index
    %2 = vector.load %arg1[%c0_1, %c0_2] : memref<4x8xf32, #tpu.memory_space<vmem>>, vector<4x8xf32>
    %3 = arith.truncf %2 : vector<4x8xf32> to vector<4x8xbf16>
    %c0_3 = arith.constant 0 : index
    %c0_4 = arith.constant 0 : index
    %4 = vector.load %arg2[%c0_3, %c0_4] : memref<16x512xbf16, #tpu.memory_space<vmem>>, vector<16x512xbf16>
    %cst = arith.constant dense<0.000000e+00> : vector<4x512xf32>
    %5 = tpu.matmul %1, %4, %cst {dimension_numbers = #tpu.dot_dimension_numbers<[1], [0], [0], [1], [0, 0, 1, 1], [], []>} : vector<4x16xbf16>, vector<16x512xbf16>, vector<4x512xf32> -> vector<4x512xf32>
    %c0_5 = arith.constant 0 : index
    %c0_6 = arith.constant 0 : index
    %6 = vector.load %arg3[%c0_5, %c0_6] : memref<8x512xbf16, #tpu.memory_space<vmem>>, vector<8x512xbf16>
    %cst_7 = arith.constant dense<0.000000e+00> : vector<4x512xf32>
    %7 = tpu.matmul %3, %6, %cst_7 {dimension_numbers = #tpu.dot_dimension_numbers<[1], [0], [0], [1], [0, 0, 1, 1], [], []>} : vector<4x8xbf16>, vector<8x512xbf16>, vector<4x512xf32> -> vector<4x512xf32>
    %8 = arith.addf %5, %7 : vector<4x512xf32>
    %cst_8 = arith.constant dense<0.000000e+00> : vector<512xf32>
    %9 = vector.multi_reduction <add>, %8, %cst_8 [0] : vector<4x512xf32> to vector<512xf32>
    %10 = vector.shape_cast %9 : vector<512xf32> to vector<1x512xf32>
    %cst_9 = arith.constant 2.500000e-01 : f32
    %11 = vector.broadcast %cst_9 : f32 to vector<1x512xf32>
    %12 = arith.mulf %10, %11 : vector<1x512xf32>
    %13 = arith.mulf %8, %8 : vector<4x512xf32>
    %cst_10 = arith.constant dense<0.000000e+00> : vector<512xf32>
    %14 = vector.multi_reduction <add>, %13, %cst_10 [0] : vector<4x512xf32> to vector<512xf32>
    %15 = vector.shape_cast %14 : vector<512xf32> to vector<1x512xf32>
    %cst_11 = arith.constant 2.500000e-01 : f32
    %16 = vector.broadcast %cst_11 : f32 to vector<1x512xf32>
    %17 = arith.mulf %15, %16 : vector<1x512xf32>
    %18 = arith.mulf %12, %12 : vector<1x512xf32>
    %19 = arith.subf %17, %18 : vector<1x512xf32>
    %cst_12 = arith.constant 0.000000e+00 : f32
    %20 = vector.broadcast %cst_12 : f32 to vector<1x512xf32>
    %21 = arith.maximumf %19, %20 : vector<1x512xf32>
    %c0_13 = arith.constant 0 : index
    %c0_14 = arith.constant 0 : index
    %22 = vector.load %arg4[%c0_13, %c0_14] : memref<1x512xf32, #tpu.memory_space<vmem>>, vector<1x512xf32>
    %cst_15 = arith.constant 9.99999974E-6 : f32
    %23 = vector.broadcast %cst_15 : f32 to vector<1x512xf32>
    %24 = arith.addf %21, %23 : vector<1x512xf32>
    %25 = math.rsqrt %24 : vector<1x512xf32>
    %26 = arith.mulf %22, %25 : vector<1x512xf32>
    %c0_16 = arith.constant 0 : index
    %c0_17 = arith.constant 0 : index
    %27 = vector.load %arg5[%c0_16, %c0_17] : memref<1x512xf32, #tpu.memory_space<vmem>>, vector<1x512xf32>
    %28 = arith.mulf %12, %26 : vector<1x512xf32>
    %29 = arith.subf %27, %28 : vector<1x512xf32>
    %30 = vector.broadcast %26 : vector<1x512xf32> to vector<4x512xf32>
    %31 = arith.mulf %8, %30 : vector<4x512xf32>
    %32 = vector.broadcast %29 : vector<1x512xf32> to vector<4x512xf32>
    %33 = arith.addf %31, %32 : vector<4x512xf32>
    %cst_18 = arith.constant 0.00999999977 : f32
    %34 = vector.broadcast %cst_18 : f32 to vector<4x512xf32>
    %35 = arith.mulf %34, %33 : vector<4x512xf32>
    %36 = arith.maximumf %33, %35 : vector<4x512xf32>
    %37 = arith.truncf %36 : vector<4x512xf32> to vector<4x512xbf16>
    %c0_19 = arith.constant 0 : index
    %c0_20 = arith.constant 0 : index
    %38 = vector.load %arg6[%c0_19, %c0_20] : memref<512x256xbf16, #tpu.memory_space<vmem>>, vector<512x256xbf16>
    %cst_21 = arith.constant dense<0.000000e+00> : vector<4x256xf32>
    %39 = tpu.matmul %37, %38, %cst_21 {dimension_numbers = #tpu.dot_dimension_numbers<[1], [0], [0], [1], [0, 0, 1, 1], [], []>} : vector<4x512xbf16>, vector<512x256xbf16>, vector<4x256xf32> -> vector<4x256xf32>
    %c0_22 = arith.constant 0 : index
    %c0_23 = arith.constant 0 : index
    %40 = vector.load %arg7[%c0_22, %c0_23] : memref<1x256xf32, #tpu.memory_space<vmem>>, vector<1x256xf32>
    %41 = vector.broadcast %40 : vector<1x256xf32> to vector<4x256xf32>
    %42 = arith.addf %39, %41 : vector<4x256xf32>
    %cst_24 = arith.constant 0.00999999977 : f32
    %43 = vector.broadcast %cst_24 : f32 to vector<4x256xf32>
    %44 = arith.mulf %43, %42 : vector<4x256xf32>
    %45 = arith.maximumf %42, %44 : vector<4x256xf32>
    %c0_25 = arith.constant 0 : index
    %c0_26 = arith.constant 0 : index
    %46 = vector.load %arg8[%c0_25, %c0_26] : memref<1x256xf32, #tpu.memory_space<vmem>>, vector<1x256xf32>
    %47 = vector.broadcast %46 : vector<1x256xf32> to vector<4x256xf32>
    %48 = arith.mulf %45, %47 : vector<4x256xf32>
    %cst_27 = arith.constant dense<0.000000e+00> : vector<4xf32>
    %49 = vector.multi_reduction <add>, %48, %cst_27 [1] : vector<4x256xf32> to vector<4xf32>
    %50 = vector.shape_cast %49 : vector<4xf32> to vector<4x1xf32>
    %c0_28 = arith.constant 0 : index
    %c0_29 = arith.constant 0 : index
    %51 = vector.load %arg9[%c0_28, %c0_29] : memref<1x1xf32, #tpu.memory_space<vmem>>, vector<1x1xf32>
    %52 = vector.broadcast %51 : vector<1x1xf32> to vector<4x1xf32>
    %53 = arith.addf %50, %52 : vector<4x1xf32>
    %c0_30 = arith.constant 0 : index
    %c0_31 = arith.constant 0 : index
    %54 = vector.load %arg10[%c0_30, %c0_31] : memref<4x1xf32, #tpu.memory_space<vmem>>, vector<4x1xf32>
    tpu.vector_store %arg10[%c0_30, %c0_31], %53 {strides = array<i32>} : memref<4x1xf32, #tpu.memory_space<vmem>>, vector<4x1xf32>,
    return
  }
}

</mosaic_0001>

<bundles_post_ra>
// kernel: tpu_custom_call.1
= control target key start
LH: loop header
LB: loop body
LE: loop exit
PB: predicated region body
PF: predicated region fallthrough
CT: control target
= control target key end

     0   :  { %s1541_s0 = inlined_call_operand.hbm [shape: f32[4,16], index: 0, kind: input, shape index: {}]   ;;  %s1542_s1 = inlined_call_operand.vmem [shape: f32[4,8], index: 1, kind: input, shape index: {}]   ;;  %s1543_s2 = inlined_call_operand.hbm [shape: bf16[16,512], index: 2, kind: input, shape index: {}]   ;;  %s1544_s3 = inlined_call_operand.hbm [shape: bf16[8,512], index: 3, kind: input, shape index: {}]   ;;  %s1545_s4 = inlined_call_operand.vmem [shape: f32[1,512], index: 4, kind: input, shape index: {}]   ;;  %s1546_s5 = inlined_call_operand.vmem [shape: f32[1,512], index: 5, kind: input, shape index: {}]   ;;  %s1547_s6 = inlined_call_operand.hbm [shape: bf16[512,256], index: 6, kind: input, shape index: {}]   ;;  %s1548_s7 = inlined_call_operand.vmem [shape: f32[1,256], index: 7, kind: input, shape index: {}]   ;;  %s1549_s8 = inlined_call_operand.vmem [shape: f32[1,256], index: 8, kind: input, shape index: {}]   ;;  %s1550_s9 = inlined_call_operand.<no memory space> [shape: f32[1,1], index: 9, kind: input, shape index: {}]   ;;  %s1551_s10 = inlined_call_operand.vmem [shape: f32[4,1], index: 10, kind: output, shape index: {}]  }
   0x1   :  { %v15_v0 = vstv %s1550_s9 }
   0x2   :  { %16 = vst [vmem:[#allocation2] sm:$0x1] %v15_v0 }
   0x3   :  { %17 = vsyncpa [#allocation4], 0 }
   0x4   :  { %18 = vsyncpa [#allocation6], 0 }
   0x5   :  { %19 = vsyncpa [#allocation9], 0  ;;  %s1357_s15 = smov [#allocation5]   ;;  %s1263_s19 = scalar_lea.hbm %s1543_s2, 512 }
   0x6   :  { %s37_s16 = sshll.u32 %s1357_s15, 4  ;;  %p1264_p0 = scmp.ne.s32.totalorder %s1543_s2, %s1263_s19  ;;  %s38_s16 = int_to_ptr.vmem [resolvable:$true] %s37_s16 }
   0x7   :  { %p1267_p1 = scmp.lt.u32.totalorder %s1263_s19, %s1543_s2 }
   0x9   :  { %p1269_p2 = pnand %p1267_p1, %p1264_p0 }
   0xb   :  { %1272 = shalt.err (!%p1269_p2)
}
   0xc   :  { %s1273_s9 = scalar_lea.vmem %s38_s16, 512  ;;  %p1278_p4 = scmp.lt.s32.totalorder %s38_s16, %s38_s16 }
   0xd   :  { %p1274_p3 = scmp.ne.s32.totalorder %s38_s16, %s1273_s9  ;;  %p1279_p5 = scmp.lt.s32.totalorder %s1273_s9, %s1273_s9 }
   0xf   :  { %p1280_p6 = por %p1279_p5, %p1278_p4 }
  0x11   :  { %p1281_p7 = pnand %p1280_p6, %p1274_p3 }
  0x13   :  { %1284 = shalt.err (!%p1281_p7)
}
  0x14   :  { %s1358_s24 = smov 256   ;;  %s1359_s25 = smov 16  }
  0x15   :  { %43 = dma.hbm_to_vmem [thread:$0]  %s1543_s2, 512, %s38_s16, [#allocation6], %s1358_s24, %s1358_s24, %s1359_s25  }
  0x16   :  { %s1360_s28 = smov [#allocation3]   ;;  %s1361_s30 = smov [#allocation7]  }
  0x17   :  { %s26_s29 = sshll.u32 %s1360_s28, 4  ;;  %s50_s11 = sshll.u32 %s1361_s30, 4  ;;  %s27_s29 = int_to_ptr.vmem [resolvable:$true] %s26_s29  ;;  %s51_s11 = int_to_ptr.vmem [resolvable:$true] %s50_s11 }
  0x18   :  { %s1285_s14 = scalar_lea.hbm %s1541_s0, 64 }
  0x19   :  { %p1286_p8 = scmp.ne.s32.totalorder %s1541_s0, %s1285_s14  ;;  %p1289_p9 = scmp.lt.u32.totalorder %s1285_s14, %s1541_s0 }
  0x1b   :  { %p1291_p10 = pnand %p1289_p9, %p1286_p8 }
  0x1d   :  { %1294 = shalt.err (!%p1291_p10)
}
  0x1e   :  { %s1295_s2 = scalar_lea.vmem %s27_s29, 64  ;;  %p1300_p12 = scmp.lt.s32.totalorder %s27_s29, %s27_s29 }
  0x1f   :  { %p1296_p11 = scmp.ne.s32.totalorder %s27_s29, %s1295_s2  ;;  %p1301_p13 = scmp.lt.s32.totalorder %s1295_s2, %s1295_s2 }
  0x21   :  { %p1302_p0 = por %p1301_p13, %p1300_p12 }
  0x23   :  { %p1303_p1 = pnand %p1302_p0, %p1296_p11 }
  0x25   :  { %1306 = shalt.err (!%p1303_p1)
}
  0x26   :  { %29 = dma.hbm_to_vmem [thread:$0]  %s1541_s0, 64, %s27_s29, [#allocation4]  }
  0x27   :  { %s1307_s23 = scalar_lea.hbm %s1544_s3, 256 }
  0x28   :  { %p1308_p2 = scmp.ne.s32.totalorder %s1544_s3, %s1307_s23  ;;  %p1311_p3 = scmp.lt.u32.totalorder %s1307_s23, %s1544_s3 }
  0x2a   :  { %p1313_p4 = pnand %p1311_p3, %p1308_p2 }
  0x2c   :  { %1316 = shalt.err (!%p1313_p4)
}
  0x2d   :  { %s1317_s27 = scalar_lea.vmem %s51_s11, 256  ;;  %p1322_p6 = scmp.lt.s32.totalorder %s51_s11, %s51_s11 }
  0x2e   :  { %p1318_p5 = scmp.ne.s32.totalorder %s51_s11, %s1317_s27  ;;  %p1323_p7 = scmp.lt.s32.totalorder %s1317_s27, %s1317_s27 }
  0x30   :  { %p1324_p8 = por %p1323_p7, %p1322_p6 }
  0x32   :  { %p1325_p9 = pnand %p1324_p8, %p1318_p5 }
  0x34   :  { %1328 = shalt.err (!%p1325_p9)
}
  0x35   :  { %53 = dma.hbm_to_vmem [thread:$0]  %s1544_s3, 256, %s51_s11, [#allocation6]  }
  0x36   :  { %s1362_s29 = smov [#allocation8]   ;;  %s1329_s14 = scalar_lea.hbm %s1547_s6, 8192 }
  0x37   :  { %s63_s30 = sshll.u32 %s1362_s29, 4  ;;  %p1330_p10 = scmp.ne.s32.totalorder %s1547_s6, %s1329_s14  ;;  %s64_s30 = int_to_ptr.vmem [resolvable:$true] %s63_s30 }
  0x38   :  { %p1333_p11 = scmp.lt.u32.totalorder %s1329_s14, %s1547_s6 }
  0x3a   :  { %p1335_p12 = pnand %p1333_p11, %p1330_p10 }
  0x3c   :  { %1338 = shalt.err (!%p1335_p12)
}
  0x3d   :  { %s1339_s2 = scalar_lea.vmem %s64_s30, 8192  ;;  %p1344_p0 = scmp.lt.s32.totalorder %s64_s30, %s64_s30 }
  0x3e   :  { %p1340_p13 = scmp.ne.s32.totalorder %s64_s30, %s1339_s2  ;;  %p1345_p1 = scmp.lt.s32.totalorder %s1339_s2, %s1339_s2 }
  0x40   :  { %p1346_p2 = por %p1345_p1, %p1344_p0 }
  0x42   :  { %p1347_p3 = pnand %p1346_p2, %p1340_p13 }
  0x44   :  { %1350 = shalt.err (!%p1347_p3)
}
  0x45   :  { %s1363_s3 = smov 128   ;;  %s1364_s11 = smov 8  }
  0x46   :  { %69 = dma.hbm_to_vmem [thread:$0]  %s1547_s6, 8192, %s64_s30, [#allocation9], %s1363_s3, %s1363_s3, %s1364_s11  }
  0x47   :  { %1351 = dma.done.wait [#allocation4], 64  }
  0x48   :  { %1352 = vsyncadd [#allocation4], 4294967232 }
  0x49   :  { %1353 = dma.done.wait [#allocation6], 768  }
  0x4a   :  { %1354 = vsyncadd [#allocation6], 4294966528 }
  0x4b   :  { %1355 = dma.done.wait [#allocation9], 8192  }
  0x4c   :  { %1356 = vsyncadd [#allocation9], 4294959104  ;;  %v1365_v1 = vmov 0   ;;  %v97_v2 = vld [vmem:[#allocation7] sm:$0xff]  ;;  %vm113_vm0 = vcmask 1043456   ;;  %v98_v3 = vld [vmem:[#allocation7 + $0x8] sm:$0xff] }
  0x4d   :  { %158 = vmatprep.mubr.bf16.mxu0 %v1365_v1  ;;  %199 = vmatprep.mubr.bf16.mxu1 %v1365_v1  ;;  %v91_v4 = vld [vmem:[%s1542_s1] sm:$0xf]  ;;  %v1049_v5 = vcombine.high %v97_v2, %v97_v2  ;;  %v1051_v6 = vcombine.high %v98_v3, %v98_v3  ;;  %v1048_v7 = vcombine.low %v97_v2, %v97_v2  ;;  %v1155_v9 = vld [vmem:[#allocation5 + $0x4] ss:$16 sps:$4 sm:$0xff]   ;;  %v1153_v13 = vld [vmem:[#allocation5] ss:$16 sps:$4 sm:$0xff]  }
  0x4e   :  { %v1050_v8 = vcombine.low %v98_v3, %v98_v3  ;;  %v92_v12 = vpack.c.bf16 %v91_v4, %v91_v4  ;;  %v1158_v14 = vld [vmem:[#allocation5 + $0xc] ss:$16 sps:$4 sm:$0xff]   ;;  %vm109_vm1 = vcmask 64512   ;;  %v1156_v15 = vld [vmem:[#allocation5 + $0x8] ss:$16 sps:$4 sm:$0xff]   ;;  %vm228_vm2 = vcmask 130048  }
  0x4f   :  { %1052 = vmatprep.subr.msk.bf16.mxu0 %vm113_vm0, %v1049_v5  ;;  %1054 = vmatprep.subr.msk.bf16.mxu1 %vm113_vm0, %v1051_v6  ;;  %v115_v10 = vsel %vm113_vm0, %v1048_v7, 0  ;;  %v89_v16 = vld [vmem:[#allocation3] sm:$0xf]  ;;  %v1159_v20 = vld [vmem:[#allocation8] ss:$8 sps:$4 sm:$0xff]   ;;  %vm1039_vm3 = vcmask 3072  }
  0x50   :  { %v121_v11 = vsel %vm113_vm0, %v1050_v8, 0  ;;  %127 = vmatpush1.bf16.msra.mxu0 %v115_v10  ;;  %v90_v17 = vpack.c.bf16 %v89_v16, %v89_v16  ;;  %v1161_v18 = vld [vmem:[#allocation8 + $0x4] ss:$8 sps:$4 sm:$0xff]   ;;  %v1162_v21 = vld [vmem:[#allocation8 + $0x100] ss:$8 sps:$4 sm:$0xff]  }
  0x51   :  { %168 = vmatpush1.bf16.msra.mxu1 %v121_v11  ;;  %232 = vmatprep.subr.bf16.mxu0 %v1155_v9  ;;  %v1164_v19 = vld [vmem:[#allocation8 + $0x104] ss:$8 sps:$4 sm:$0xff]   ;;  %v1167_v22 = vld [vmem:[#allocation8 + $0x14] ss:$8 sps:$4 sm:$0xff]   ;;  %v1165_v24 = vld [vmem:[#allocation8 + $0x10] ss:$8 sps:$4 sm:$0xff]  }
  0x52   :  { %273 = vmatprep.subr.bf16.mxu1 %v1158_v14  ;;  %v1170_v23 = vld [vmem:[#allocation8 + $0x114] ss:$8 sps:$4 sm:$0xff]   ;;  %v1168_v25 = vld [vmem:[#allocation8 + $0x110] ss:$8 sps:$4 sm:$0xff]   ;;  %v1173_v26 = vld [vmem:[#allocation8 + $0x24] ss:$8 sps:$4 sm:$0xff]  }
  0x53   :  { %1053 = vmatmul.mubr.msk.bf16.vlgmr.msra.gmra.mrb[0].mxu0 %vm109_vm1, %v92_v12  ;;  %v1176_v27 = vld [vmem:[#allocation8 + $0x124] ss:$8 sps:$4 sm:$0xff]   ;;  %v1171_v28 = vld [vmem:[#allocation8 + $0x20] ss:$8 sps:$4 sm:$0xff]   ;;  %v1179_v30 = vld [vmem:[#allocation8 + $0x34] ss:$8 sps:$4 sm:$0xff]  }
  0x54   :  { %1055 = vmatmul.mubr.msk.bf16.vlgmr.msra.gmra.mrb[0].mxu1 %vm109_vm1, %v92_v12  ;;  %233 = vmatpush1.bf16.msra.mxu0 %v1153_v13  ;;  %v1174_v29 = vld [vmem:[#allocation8 + $0x120] ss:$8 sps:$4 sm:$0xff]   ;;  %v1182_v31 = vld [vmem:[#allocation8 + $0x134] ss:$8 sps:$4 sm:$0xff]   ;;  %v1177_v32 = vld [vmem:[#allocation8 + $0x30] ss:$8 sps:$4 sm:$0xff]  }
  0x55   :  { %274 = vmatpush1.bf16.msra.mxu1 %v1156_v15  ;;  %264 = vmatprep.mubr.bf16.mxu0 %v1365_v1  ;;  %v1180_v33 = vld [vmem:[#allocation8 + $0x130] ss:$8 sps:$4 sm:$0xff]   ;;  %v1185_v34 = vld [vmem:[#allocation8 + $0x44] ss:$8 sps:$4 sm:$0xff]   ;;  %v1183_v36 = vld [vmem:[#allocation8 + $0x40] ss:$8 sps:$4 sm:$0xff]  }
  0x56   :  { %305 = vmatprep.mubr.bf16.mxu1 %v1365_v1  ;;  %926 = vmatprep.subr.bf16.mxu1 %v1161_v18  ;;  %v1188_v35 = vld [vmem:[#allocation8 + $0x144] ss:$8 sps:$4 sm:$0xff]   ;;  %v1186_v37 = vld [vmem:[#allocation8 + $0x140] ss:$8 sps:$4 sm:$0xff]   ;;  %v1191_v38 = vld [vmem:[#allocation8 + $0x54] ss:$8 sps:$4 sm:$0xff]  }
  0x57   :  { %967 = vmatprep.subr.bf16.mxu0 %v1164_v19  ;;  %v1194_v39 = vld [vmem:[#allocation8 + $0x154] ss:$8 sps:$4 sm:$0xff]   ;;  %v1189_v40 = vld [vmem:[#allocation8 + $0x50] ss:$8 sps:$4 sm:$0xff]   ;;  %v1197_v42 = vld [vmem:[#allocation8 + $0x64] ss:$8 sps:$4 sm:$0xff]  }
  0x58   :  { %v1192_v41 = vld [vmem:[#allocation8 + $0x150] ss:$8 sps:$4 sm:$0xff]   ;;  %v1200_v43 = vld [vmem:[#allocation8 + $0x164] ss:$8 sps:$4 sm:$0xff]   ;;  %v1195_v44 = vld [vmem:[#allocation8 + $0x60] ss:$8 sps:$4 sm:$0xff]  }
  0x59   :  { %v1198_v45 = vld [vmem:[#allocation8 + $0x160] ss:$8 sps:$4 sm:$0xff]   ;;  %v1203_v46 = vld [vmem:[#allocation8 + $0x74] ss:$8 sps:$4 sm:$0xff]   ;;  %v1201_v48 = vld [vmem:[#allocation8 + $0x70] ss:$8 sps:$4 sm:$0xff]  }
  0x5a   :  { %v1206_v47 = vld [vmem:[#allocation8 + $0x174] ss:$8 sps:$4 sm:$0xff]   ;;  %v1204_v49 = vld [vmem:[#allocation8 + $0x170] ss:$8 sps:$4 sm:$0xff]   ;;  %v1209_v50 = vld [vmem:[#allocation8 + $0x84] ss:$8 sps:$4 sm:$0xff]  }
  0x5b   :  { %v1212_v51 = vld [vmem:[#allocation8 + $0x184] ss:$8 sps:$4 sm:$0xff]   ;;  %v1207_v52 = vld [vmem:[#allocation8 + $0x80] ss:$8 sps:$4 sm:$0xff]   ;;  %v1215_v54 = vld [vmem:[#allocation8 + $0x94] ss:$8 sps:$4 sm:$0xff]  }
  0x5c   :  { %v1210_v53 = vld [vmem:[#allocation8 + $0x180] ss:$8 sps:$4 sm:$0xff]   ;;  %v1218_v55 = vld [vmem:[#allocation8 + $0x194] ss:$8 sps:$4 sm:$0xff]   ;;  %v1213_v56 = vld [vmem:[#allocation8 + $0x90] ss:$8 sps:$4 sm:$0xff]  }
  0x5d   :  { %v1216_v57 = vld [vmem:[#allocation8 + $0x190] ss:$8 sps:$4 sm:$0xff]   ;;  %v1221_v58 = vld [vmem:[#allocation8 + $0xa4] ss:$8 sps:$4 sm:$0xff]   ;;  %v1219_v60 = vld [vmem:[#allocation8 + $0xa0] ss:$8 sps:$4 sm:$0xff]  }
  0x5e   :  { %v1224_v59 = vld [vmem:[#allocation8 + $0x1a4] ss:$8 sps:$4 sm:$0xff]   ;;  %v1222_v61 = vld [vmem:[#allocation8 + $0x1a0] ss:$8 sps:$4 sm:$0xff]   ;;  %v1227_v62 = vld [vmem:[#allocation8 + $0xb4] ss:$8 sps:$4 sm:$0xff]  }
  0x5f   :  { %1060 = vmatmul.mubr.msk.bf16.vlgmr.msra.gmra.mrb[0].mxu0 %vm228_vm2, %v90_v17  ;;  %v1230_v63 = vld [vmem:[#allocation8 + $0x1b4] ss:$8 sps:$4 sm:$0xff]   ;;  %v1225_v0 = vld [vmem:[#allocation8 + $0xb0] ss:$8 sps:$4 sm:$0xff]   ;;  %v1233_v2 = vld [vmem:[#allocation8 + $0xc4] ss:$8 sps:$4 sm:$0xff]  }
  0x60   :  { %1061 = vmatmul.mubr.msk.bf16.vlgmr.msra.gmra.mrb[0].mxu1 %vm228_vm2, %v90_v17  ;;  %968 = vmatpush1.bf16.msra.mxu0 %v1162_v21  ;;  %v1228_v1 = vld [vmem:[#allocation8 + $0x1b0] ss:$8 sps:$4 sm:$0xff]   ;;  %v1236_v3 = vld [vmem:[#allocation8 + $0x1c4] ss:$8 sps:$4 sm:$0xff]   ;;  %v1231_v4 = vld [vmem:[#allocation8 + $0xc0] ss:$8 sps:$4 sm:$0xff]  }
  0x61   :  { %927 = vmatpush1.bf16.msra.mxu1 %v1159_v20  ;;  %969 = vmatprep.subr.bf16.mxu0 %v1170_v23  ;;  %v1234_v5 = vld [vmem:[#allocation8 + $0x1c0] ss:$8 sps:$4 sm:$0xff]   ;;  %v1239_v6 = vld [vmem:[#allocation8 + $0xd4] ss:$8 sps:$4 sm:$0xff]   ;;  %v1237_v8 = vld [vmem:[#allocation8 + $0xd0] ss:$8 sps:$4 sm:$0xff]  }
  0x62   :  { %928 = vmatprep.subr.bf16.mxu1 %v1167_v22  ;;  %v1242_v7 = vld [vmem:[#allocation8 + $0x1d4] ss:$8 sps:$4 sm:$0xff]   ;;  %v1240_v9 = vld [vmem:[#allocation8 + $0x1d0] ss:$8 sps:$4 sm:$0xff]   ;;  %v1243_v10 = vld [vmem:[#allocation8 + $0xe0] ss:$8 sps:$4 sm:$0xff]  }
  0x63   :  { %v1245_v11 = vld [vmem:[#allocation8 + $0xe4] ss:$8 sps:$4 sm:$0xff]   ;;  %v1246_v12 = vld [vmem:[#allocation8 + $0x1e0] ss:$8 sps:$4 sm:$0xff]   ;;  %v1251_v14 = vld [vmem:[#allocation8 + $0xf4] ss:$8 sps:$4 sm:$0xff]  }
  0x64   :  { %970 = vmatpush1.bf16.msra.mxu0 %v1168_v25  ;;  %v1248_v13 = vld [vmem:[#allocation8 + $0x1e4] ss:$8 sps:$4 sm:$0xff]   ;;  %v1254_v15 = vld [vmem:[#allocation8 + $0x1f4] ss:$8 sps:$4 sm:$0xff]   ;;  %v1249_v16 = vld [vmem:[#allocation8 + $0xf0] ss:$8 sps:$4 sm:$0xff]  }
  0x65   :  { %929 = vmatpush1.bf16.msra.mxu1 %v1165_v24  ;;  %971 = vmatprep.subr.bf16.mxu0 %v1176_v27  ;;  %v1252_v17 = vld [vmem:[#allocation8 + $0x1f0] ss:$8 sps:$4 sm:$0xff]  }
  0x66   :  { %930 = vmatprep.subr.bf16.mxu1 %v1173_v26 }
  0x68   :  { %972 = vmatpush1.bf16.msra.mxu0 %v1174_v29 }
  0x69   :  { %931 = vmatpush1.bf16.msra.mxu1 %v1171_v28  ;;  %973 = vmatprep.subr.bf16.mxu0 %v1182_v31 }
  0x6a   :  { %932 = vmatprep.subr.bf16.mxu1 %v1179_v30 }
  0x6c   :  { %974 = vmatpush1.bf16.msra.mxu0 %v1180_v33 }
  0x6d   :  { %933 = vmatpush1.bf16.msra.mxu1 %v1177_v32  ;;  %975 = vmatprep.subr.bf16.mxu0 %v1188_v35 }
  0x6e   :  { %934 = vmatprep.subr.bf16.mxu1 %v1185_v34 }
  0x70   :  { %976 = vmatpush1.bf16.msra.mxu0 %v1186_v37 }
  0x71   :  { %935 = vmatpush1.bf16.msra.mxu1 %v1183_v36  ;;  %977 = vmatprep.subr.bf16.mxu0 %v1194_v39 }
  0x72   :  { %936 = vmatprep.subr.bf16.mxu1 %v1191_v38 }
  0x74   :  { %978 = vmatpush1.bf16.msra.mxu0 %v1192_v41 }
  0x75   :  { %937 = vmatpush1.bf16.msra.mxu1 %v1189_v40  ;;  %979 = vmatprep.subr.bf16.mxu0 %v1200_v43 }
  0x76   :  { %938 = vmatprep.subr.bf16.mxu1 %v1197_v42 }
  0x78   :  { %980 = vmatpush1.bf16.msra.mxu0 %v1198_v45 }
  0x79   :  { %939 = vmatpush1.bf16.msra.mxu1 %v1195_v44  ;;  %981 = vmatprep.subr.bf16.mxu0 %v1206_v47 }
  0x7a   :  { %940 = vmatprep.subr.bf16.mxu1 %v1203_v46 }
  0x7c   :  { %982 = vmatpush1.bf16.msra.mxu0 %v1204_v49 }
  0x7d   :  { %941 = vmatpush1.bf16.msra.mxu1 %v1201_v48  ;;  %983 = vmatprep.subr.bf16.mxu0 %v1212_v51 }
  0x7e   :  { %942 = vmatprep.subr.bf16.mxu1 %v1209_v50 }
  0x80   :  { %984 = vmatpush1.bf16.msra.mxu0 %v1210_v53 }
  0x81   :  { %943 = vmatpush1.bf16.msra.mxu1 %v1207_v52  ;;  %985 = vmatprep.subr.bf16.mxu0 %v1218_v55 }
  0x82   :  { %944 = vmatprep.subr.bf16.mxu1 %v1215_v54 }
  0x84   :  { %986 = vmatpush1.bf16.msra.mxu0 %v1216_v57 }
  0x85   :  { %945 = vmatpush1.bf16.msra.mxu1 %v1213_v56  ;;  %987 = vmatprep.subr.bf16.mxu0 %v1224_v59 }
  0x86   :  { %946 = vmatprep.subr.bf16.mxu1 %v1221_v58 }
  0x88   :  { %988 = vmatpush1.bf16.msra.mxu0 %v1222_v61 }
  0x89   :  { %947 = vmatpush1.bf16.msra.mxu1 %v1219_v60  ;;  %989 = vmatprep.subr.bf16.mxu0 %v1230_v63 }
  0x8a   :  { %948 = vmatprep.subr.bf16.mxu1 %v1227_v62 }
  0x8c   :  { %990 = vmatpush1.bf16.msra.mxu0 %v1228_v1 }
  0x8d   :  { %949 = vmatpush1.bf16.msra.mxu1 %v1225_v0  ;;  %991 = vmatprep.subr.bf16.mxu0 %v1236_v3 }
  0x8e   :  { %950 = vmatprep.subr.bf16.mxu1 %v1233_v2 }
  0x90   :  { %992 = vmatpush1.bf16.msra.mxu0 %v1234_v5 }
  0x91   :  { %951 = vmatpush1.bf16.msra.mxu1 %v1231_v4  ;;  %993 = vmatprep.subr.bf16.mxu0 %v1242_v7 }
  0x92   :  { %952 = vmatprep.subr.bf16.mxu1 %v1239_v6 }
  0x94   :  { %994 = vmatpush1.bf16.msra.mxu0 %v1240_v9 }
  0x95   :  { %953 = vmatpush1.bf16.msra.mxu1 %v1237_v8  ;;  %995 = vmatprep.subr.bf16.mxu0 %v1248_v13 }
  0x96   :  { %954 = vmatprep.subr.bf16.mxu1 %v1245_v11 }
  0x98   :  { %996 = vmatpush1.bf16.msra.mxu0 %v1246_v12 }
  0x99   :  { %955 = vmatpush1.bf16.msra.mxu1 %v1243_v10  ;;  %997 = vmatprep.subr.bf16.mxu0 %v1254_v15 }
  0x9a   :  { %956 = vmatprep.subr.bf16.mxu1 %v1251_v14 }
  0x9c   :  { %998 = vmatpush1.bf16.msra.mxu0 %v1252_v17 }
  0x9d   :  { %957 = vmatpush1.bf16.msra.mxu1 %v1249_v16 }
 0x132   :  { %v1480_v18 = vpop.f32.mrb[0].mxu0 }
 0x133   :  { %v1482_v19 = vpop.f32.mrb[0].mxu1  ;;  %v314_v20 = vsel %vm113_vm0, %v1480_v18, 0.0  ;;  %v346_v21 = vmul.f32 %v1480_v18, %v1480_v18  ;;  %v1492_v24 = vpop.f32.mrb[1].mxu0 }
 0x134   :  { %v328_v22 = vsel %vm113_vm0, %v1482_v19, 0.0  ;;  %v348_v23 = vmul.f32 %v1482_v19, %v1482_v19  ;;  %v1494_v25 = vpop.f32.mrb[1].mxu1  ;;  %v315_v26 = vrot.slane %v314_v20, 4  ;;  %v321_v28 = vsel %vm113_vm0, %v1492_v24, 0.0  ;;  %v270_v30 = vpop.f32.mrb[2].mxu0 }
 0x135   :  { %v329_v27 = vrot.slane %v328_v22, 4  ;;  %v347_v29 = vmul.f32 %v1492_v24, %v1492_v24  ;;  %v311_v31 = vpop.f32.mrb[2].mxu1  ;;  %v350_v32 = vsel %vm113_vm0, %v346_v21, 0.0  ;;  %v322_v34 = vrot.slane %v321_v28, 4  ;;  %v271_v36 = vpop.f32.mrb[3].mxu0 }
 0x136   :  { %v364_v33 = vsel %vm113_vm0, %v348_v23, 0.0  ;;  %v335_v35 = vsel %vm113_vm0, %v1494_v25, 0.0  ;;  %v312_v37 = vpop.f32.mrb[3].mxu1  ;;  %v316_v38 = vadd.f32 %v315_v26, %v314_v20  ;;  %v351_v39 = vrot.slane %v350_v32, 4 }
 0x137   :  { %v330_v40 = vadd.f32 %v329_v27, %v328_v22  ;;  %v365_v41 = vrot.slane %v364_v33, 4  ;;  %v323_v42 = vadd.f32 %v322_v34, %v321_v28  ;;  %v357_v43 = vsel %vm113_vm0, %v347_v29, 0.0 }
 0x138   :  { %v336_v44 = vrot.slane %v335_v35, 4  ;;  %v349_v45 = vmul.f32 %v1494_v25, %v1494_v25  ;;  %v317_v46 = vrot.slane %v316_v38, 2  ;;  %v352_v47 = vadd.f32 %v351_v39, %v350_v32 }
 0x139   :  { %v331_v48 = vrot.slane %v330_v40, 2  ;;  %v366_v49 = vadd.f32 %v365_v41, %v364_v33  ;;  %v324_v50 = vrot.slane %v323_v42, 2  ;;  %v358_v51 = vrot.slane %v357_v43, 4 }
 0x13a   :  { %v337_v52 = vadd.f32 %v336_v44, %v335_v35  ;;  %v371_v53 = vsel %vm113_vm0, %v349_v45, 0.0  ;;  %v318_v54 = vadd.f32 %v317_v46, %v316_v38  ;;  %v353_v55 = vrot.slane %v352_v47, 2 }
 0x13b   :  { %v332_v56 = vadd.f32 %v331_v48, %v330_v40  ;;  %v367_v57 = vrot.slane %v366_v49, 2  ;;  %v325_v58 = vadd.f32 %v324_v50, %v323_v42  ;;  %v359_v59 = vadd.f32 %v358_v51, %v357_v43 }
 0x13c   :  { %v338_v60 = vrot.slane %v337_v52, 2  ;;  %v372_v61 = vrot.slane %v371_v53, 4  ;;  %v319_v62 = vrot.slane %v318_v54, 1  ;;  %v354_v63 = vadd.f32 %v353_v55, %v352_v47 }
 0x13d   :  { %v333_v0 = vrot.slane %v332_v56, 1  ;;  %v368_v1 = vadd.f32 %v367_v57, %v366_v49  ;;  %v326_v2 = vrot.slane %v325_v58, 1  ;;  %v360_v3 = vrot.slane %v359_v59, 2 }
 0x13e   :  { %v339_v4 = vadd.f32 %v338_v60, %v337_v52  ;;  %v373_v5 = vadd.f32 %v372_v61, %v371_v53  ;;  %v320_v6 = vadd.f32 %v319_v62, %v318_v54  ;;  %v355_v7 = vrot.slane %v354_v63, 1 }
 0x13f   :  { %v334_v8 = vadd.f32 %v333_v0, %v332_v56  ;;  %v369_v9 = vrot.slane %v368_v1, 1  ;;  %v327_v10 = vadd.f32 %v326_v2, %v325_v58  ;;  %v361_v11 = vadd.f32 %v360_v3, %v359_v59 }
 0x140   :  { %v340_v12 = vrot.slane %v339_v4, 1  ;;  %v374_v13 = vrot.slane %v373_v5, 2  ;;  %v342_v14 = vmul.f32 0.25, %v320_v6  ;;  %v356_v15 = vadd.f32 %v355_v7, %v354_v63 }
 0x141   :  { %v344_v16 = vmul.f32 0.25, %v334_v8  ;;  %v370_v17 = vadd.f32 %v369_v9, %v368_v1  ;;  %v343_v20 = vmul.f32 0.25, %v327_v10  ;;  %v362_v21 = vrot.slane %v361_v11, 1  ;;  %v394_v1 = vld [vmem:[%s1545_s4] sm:$0xf] }
 0x142   :  { %v341_v22 = vadd.f32 %v340_v12, %v339_v4  ;;  %v375_v23 = vadd.f32 %v374_v13, %v373_v5  ;;  %v378_v26 = vmul.f32 0.25, %v356_v15  ;;  %v382_v27 = vmul.f32 %v342_v14, %v342_v14 }
 0x143   :  { %v380_v28 = vmul.f32 0.25, %v370_v17  ;;  %v384_v29 = vmul.f32 %v344_v16, %v344_v16  ;;  %v363_v30 = vadd.f32 %v362_v21, %v361_v11  ;;  %v383_v31 = vmul.f32 %v343_v20, %v343_v20 }
 0x144   :  { %v345_v32 = vmul.f32 0.25, %v341_v22  ;;  %v376_v33 = vrot.slane %v375_v23, 1  ;;  %v386_v34 = vsub.f32 %v378_v26, %v382_v27  ;;  %v1366_v50 = vmov 1966171168  }
 0x145   :  { %v388_v35 = vsub.f32 %v380_v28, %v384_v29  ;;  %v379_v36 = vmul.f32 0.25, %v363_v30  ;;  %v410_v51 = vunpack.c.l.s4 %v1366_v50  ;;  %v412_v52 = vlaneseq }
 0x146   :  { %v377_v37 = vadd.f32 %v376_v33, %v375_v23  ;;  %v385_v38 = vmul.f32 %v345_v32, %v345_v32  ;;  %v390_v39 = vmax.f32 %v386_v34, 0.0 }
 0x147   :  { %v392_v40 = vmax.f32 %v388_v35, 0.0  ;;  %v387_v41 = vsub.f32 %v379_v36, %v383_v31  ;;  %v411_v53 = vunpack.c.0.s8 %v410_v51  ;;  %v413_v54 = vshrl.u32 %v412_v52, 7 }
 0x148   :  { %v381_v42 = vmul.f32 0.25, %v377_v37  ;;  %v395_v43 = vadd.f32 1e-05, %v390_v39 }
 0x149   :  { %v397_v44 = vadd.f32 1e-05, %v392_v40  ;;  %v391_v45 = vmax.f32 %v387_v41, 0.0  ;;  %v414_v57 = vsub.s32 %v411_v53, %v413_v54  ;;  %v1511_v2 = vsub.s32 0, %v413_v54 }
 0x14a   :  { %v389_v46 = vsub.f32 %v381_v42, %v385_v38  ;;  %1255 = vrsqrt.f32 %v395_v43  ;;  %v1513_v4 = vsub.s32 1, %v413_v54  ;;  %v445_v5 = vsub.s32 2, %v413_v54 }
 0x14b   :  { %v396_v47 = vadd.f32 1e-05, %v391_v45  ;;  %1257 = vrsqrt.f32 %v397_v44  ;;  %v449_v6 = vsub.s32 3, %v413_v54 }
 0x14c   :  { %v393_v48 = vmax.f32 %v389_v46, 0.0 }
 0x14d   :  { %1259 = vrsqrt.f32 %v396_v47 }
 0x14e   :  { %v398_v49 = vadd.f32 1e-05, %v393_v48  ;;  %v594_v48 = vld [vmem:[%s1548_s7] sm:$0x3] }
 0x14f   :  { %v603_v50 = vrot.slane %v594_v48, %v1513_v4 }
 0x150   :  { %1261 = vrsqrt.f32 %v398_v49  ;;  %v599_v49 = vrot.slane %v594_v48, %v1511_v2 }
 0x154   :  { %v1256_v55 = vpop.eup %1255 }
 0x155   :  { %v1258_v56 = vpop.eup %1257 }
 0x157   :  { %v1260_v58 = vpop.eup %1259 }
 0x158   :  { %v407_v59 = vcombine.low %v1256_v55, %v1260_v58 }
 0x15a   :  { %v1262_v60 = vpop.eup %1261  ;;  %v415_v62 = vrot.slane %v407_v59, %v414_v57  ;;  %v1012_v59 = vld [vmem:[%s1549_s8] sm:$0x3] }
 0x15b   :  { %v408_v61 = vcombine.low %v1258_v56, %v1262_v60 }
 0x15d   :  { %v422_v63 = vrot.slane %v408_v61, %v414_v57 }
 0x15f   :  { %v423_v0 = vcombine.low %v415_v62, %v422_v63 }
 0x161   :  { %v430_v3 = vrot.slane %v423_v0, %v414_v57 }
 0x163   :  { %v432_v7 = vmul.f32 %v430_v3, %v394_v1  ;;  %v1017_v1 = vrot.slane %v1012_v59, %v1511_v2 }
 0x165   :  { %v438_v8 = vrot.slane %v432_v7, %v1511_v2  ;;  %v442_v9 = vrot.slane %v432_v7, %v1513_v4  ;;  %v446_v10 = vrot.slane %v432_v7, %v445_v5  ;;  %v450_v11 = vrot.slane %v432_v7, %v449_v6 }
 0x167   :  { %v455_v12 = vmul.f32 %v438_v8, %v342_v14  ;;  %v456_v13 = vmul.f32 %v442_v9, %v343_v20  ;;  %v457_v15 = vmul.f32 %v446_v10, %v344_v16  ;;  %v458_v17 = vmul.f32 %v450_v11, %v345_v32  ;;  %v433_v14 = vld [vmem:[%s1546_s5] sm:$0xf] }
 0x168   :  { %v492_v21 = vmul.f32 %v450_v11, %v1494_v25  ;;  %v490_v22 = vmul.f32 %v442_v9, %v1492_v24  ;;  %v489_v23 = vmul.f32 %v438_v8, %v1480_v18  ;;  %v491_v26 = vmul.f32 %v446_v10, %v1482_v19 }
 0x169   :  { %v463_v27 = vcombine.low %v455_v12, %v456_v13  ;;  %v464_v28 = vcombine.low %v457_v15, %v458_v17  ;;  %v1126_v13 = vld [vmem:[#allocation2] ss:$0 sm:$0xff] }
 0x16b   :  { %v471_v29 = vrot.slane %v463_v27, %v414_v57  ;;  %v478_v30 = vrot.slane %v464_v28, %v414_v57 }
 0x16d   :  { %v479_v31 = vcombine.low %v471_v29, %v478_v30 }
 0x16f   :  { %v486_v20 = vrot.slane %v479_v31, %v414_v57 }
 0x171   :  { %v488_v16 = vsub.f32 %v433_v14, %v486_v20 }
 0x173   :  { %v509_v32 = vrot.slane %v488_v16, %v449_v6  ;;  %v501_v25 = vrot.slane %v488_v16, %v1513_v4  ;;  %v497_v24 = vrot.slane %v488_v16, %v1511_v2  ;;  %v505_v33 = vrot.slane %v488_v16, %v445_v5 }
 0x174   :  { %v1021_v5 = vrot.slane %v1012_v59, %v1513_v4 }
 0x175   :  { %v517_v18 = vadd.f32 %v509_v32, %v492_v21  ;;  %v515_v34 = vadd.f32 %v501_v25, %v490_v22  ;;  %v514_v19 = vadd.f32 %v497_v24, %v489_v23  ;;  %v516_v35 = vadd.f32 %v505_v33, %v491_v26 }
 0x177   :  { %v519_v36 = vmul.f32 0.01, %v515_v34  ;;  %v521_v37 = vmul.f32 0.01, %v517_v18  ;;  %v518_v38 = vmul.f32 0.01, %v514_v19 }
 0x178   :  { %v520_v39 = vmul.f32 0.01, %v516_v35 }
 0x179   :  { %v523_v40 = vmax.f32 %v515_v34, %v519_v36  ;;  %v525_v41 = vmax.f32 %v517_v18, %v521_v37  ;;  %v522_v42 = vmax.f32 %v514_v19, %v518_v38 }
 0x17a   :  { %v524_v43 = vmax.f32 %v516_v35, %v520_v39 }
 0x17b   :  { %v527_v44 = vpack.c.bf16 %v523_v40, %v523_v40  ;;  %v529_v45 = vpack.c.bf16 %v525_v41, %v525_v41  ;;  %v526_v46 = vpack.c.bf16 %v522_v42, %v522_v42 }
 0x17c   :  { %v528_v47 = vpack.c.bf16 %v524_v43, %v524_v43 }
 0x17d   :  { %958 = vmatprep.mubr.bf16.mxu1 %v527_v44  ;;  %999 = vmatprep.mubr.bf16.mxu0 %v529_v45 }
 0x17e   :  { %959 = vmatmul.mubr.bf16.vlgmr.msra.gmra.mrb[4].mxu1 %v526_v46  ;;  %1000 = vmatmul.mubr.bf16.vlgmr.msra.gmra.mrb[4].mxu0 %v528_v47 }
 0x251   :  { %v960_v51 = vpop.f32.mrb[4].mxu1  ;;  %v1001_v52 = vpop.f32.mrb[4].mxu0 }
 0x252   :  { %v961_v53 = vadd.f32 %v960_v51, %v599_v49  ;;  %v962_v54 = vpop.f32.mrb[5].mxu1  ;;  %v1003_v55 = vpop.f32.mrb[5].mxu0 }
 0x253   :  { %v963_v56 = vadd.f32 %v962_v54, %v603_v50  ;;  %v964_v57 = vpop.f32.mrb[6].mxu1  ;;  %v1005_v58 = vpop.f32.mrb[6].mxu0 }
 0x254   :  { %v1002_v60 = vadd.f32 %v1001_v52, %v961_v53  ;;  %v965_v61 = vpop.f32.mrb[7].mxu1  ;;  %v1006_v62 = vpop.f32.mrb[7].mxu0 }
 0x255   :  { %v1004_v63 = vadd.f32 %v1003_v55, %v963_v56 }
 0x256   :  { %v1008_v0 = vmul.f32 0.01, %v1002_v60 }
 0x257   :  { %v1009_v3 = vmul.f32 0.01, %v1004_v63 }
 0x258   :  { %v1010_v6 = vmax.f32 %v1002_v60, %v1008_v0 }
 0x259   :  { %v1011_v7 = vmax.f32 %v1004_v63, %v1009_v3 }
 0x25a   :  { %v1024_v8 = vmul.f32 %v1017_v1, %v1010_v6 }
 0x25b   :  { %v1025_v9 = vmul.f32 %v1021_v5, %v1011_v7 }
 0x25c   :  { %v1026_v10 = vsel %vm113_vm0, %v1024_v8, 0.0 }
 0x25d   :  { %v1027_v11 = vsel %vm113_vm0, %v1025_v9, 0.0 }
 0x25e   :  { %v1028_v12 = vadd.f32 %v1027_v11, %v1026_v10 }
 0x260   :  { %1029 = vadd.xlane.f32.xlu0 %v1028_v12 }
 0x2ed   :  { %v1030_v15 = vpop.xlane.xlu0 %1029 }
 0x2ee   :  { %v1038_v17 = vadd.f32 %v1126_v13, %v1030_v15 }
 0x2f0   :  { %1040 = vst.msk [vmem:[%s1551_s10] sm:$0xf] %vm1039_vm3, %v1038_v17 }
 0x2f1   :  { %1045 = vsyncpa [#allocation4], 1 }
 0x2f2   :  { %1046 = vsyncpa [#allocation6], 1 }
 0x2f3   :  { %1047 = vsyncpa [#allocation9], 1 }

</bundles_post_ra>
